<compile_context>
chip_gen: v6e
topology: v6e:2x2x1
jax: 0.10.0
libtpu: 0.0.40
codegen_flags: <defaults>
</compile_context>

<pallas_src>
import jax
import jax.numpy as jnp
from jax.experimental import pallas as pl
from jax.experimental.pallas import tpu as pltpu

IMG_FEAT_DIM = 512
TXT_FEAT_DIM = 512
FEAT_DIM = IMG_FEAT_DIM + TXT_FEAT_DIM  # 1024

# Batch tile: 1024 rows keeps 2x double-buffered bf16 feature tiles (~4 MiB)
# + resident bf16 weights + f32 output tiles comfortably inside v7x's 64 MiB
# physical / 32 MiB scoped VMEM; v5e/v6e (128 MiB) have even more headroom.
MAX_BATCH_TILE = 1024


# ---------------------------------------------------------------------------
# Pallas kernel: logits = img_bf16 @ Wi_bf16 + txt_bf16 @ Wt_bf16 + b   (f32 acc)
# ---------------------------------------------------------------------------
def _head_kernel(img_ref, txt_ref, wi_ref, wt_ref, b_ref, o_ref):
    # img_ref: [TB, 512]  bf16     txt_ref: [TB, 512]  bf16
    # wi_ref:  [512, Cp]  bf16     wt_ref:  [512, Cp]  bf16
    # b_ref:   [1, Cp]    f32      o_ref:   [TB, Cp]   f32
    acc = jnp.dot(img_ref[...], wi_ref[...], preferred_element_type=jnp.float32)
    acc = acc + jnp.dot(txt_ref[...], wt_ref[...],
                        preferred_element_type=jnp.float32)
    o_ref[...] = acc + b_ref[...]   # bias added once on the f32 accumulator


def prepare_head_params(weight, bias):
    """One-time glue (NOT per-step): split/transpose/pad/cast PyTorch Linear
    params.  weight: [C, 1024] (PyTorch layout), bias: [C]."""
    C = weight.shape[0]
    c_pad = max(128, pl.cdiv(C, 128) * 128)
    w_t = jnp.transpose(weight)                                   # [1024, C]
    w_t = jnp.pad(w_t, ((0, 0), (0, c_pad - C)))                  # [1024, Cp]
    w_img = w_t[:IMG_FEAT_DIM].astype(jnp.bfloat16)               # [512, Cp]
    w_txt = w_t[IMG_FEAT_DIM:].astype(jnp.bfloat16)               # [512, Cp]
    b_pad = jnp.pad(bias, (0, c_pad - C)).reshape(1, c_pad).astype(jnp.float32)
    return w_img, w_txt, b_pad


def linear_head(img_feat, txt_feat, w_img, w_txt, b_pad, num_classes):
    """img_feat/txt_feat: [B, 512] bf16; returns [B, num_classes] f32."""
    B = img_feat.shape[0]
    c_pad = w_img.shape[1]
    # Full batch if small (block == full dim is always legal); otherwise tile.
    tb = B if B <= MAX_BATCH_TILE else MAX_BATCH_TILE
    grid = (pl.cdiv(B, tb),)

    out = pl.pallas_call(
        _head_kernel,
        out_shape=jax.ShapeDtypeStruct((B, c_pad), jnp.float32),
        grid_spec=pltpu.PrefetchScalarGridSpec(
            num_scalar_prefetch=0,
            grid=grid,
            in_specs=[
                pl.BlockSpec((tb, IMG_FEAT_DIM), lambda i: (i, 0)),
                pl.BlockSpec((tb, TXT_FEAT_DIM), lambda i: (i, 0)),
                # Weights / bias stay resident across all batch grid steps.
                pl.BlockSpec((IMG_FEAT_DIM, c_pad), lambda i: (0, 0)),
                pl.BlockSpec((TXT_FEAT_DIM, c_pad), lambda i: (0, 0)),
                pl.BlockSpec((1, c_pad), lambda i: (0, 0)),
            ],
            out_specs=pl.BlockSpec((tb, c_pad), lambda i: (i, 0)),
        ),
        compiler_params=pltpu.CompilerParams(
            dimension_semantics=("parallel",),
        ),
    )(img_feat, txt_feat, w_img, w_txt, b_pad)
    return out[:, :num_classes]


# ---------------------------------------------------------------------------
# Deterministic stand-in "CLIP" encoders (frozen, plain-JAX glue).
# TODO(synk): replace with real CLIP encoders if weights become available.
# ---------------------------------------------------------------------------
def encode_image_stub(images, w_img):
    # images: [B, 3, H, W] NCHW -> flatten -> project to 512, bf16 output
    B = images.shape[0]
    flat = images.reshape(B, -1).astype(jnp.float32)
    return (flat @ w_img).astype(jnp.bfloat16)


def encode_text_stub(texts, embed_table):
    # texts: [B, L] int32 token ids -> embed + mean pool -> 512, bf16 output
    emb = jnp.take(embed_table, texts, axis=0)              # [B, L, 512]
    return jnp.mean(emb, axis=1).astype(jnp.bfloat16)


# ---------------------------------------------------------------------------
# MyModel forward
# ---------------------------------------------------------------------------
def my_model_forward(params, images, texts, num_classes):
    img_feat = encode_image_stub(images, params["w_img"])    # frozen (no_grad)
    txt_feat = encode_text_stub(texts, params["embed"])      # frozen (no_grad)
    return linear_head(img_feat, txt_feat,
                       params["head_w_img"], params["head_w_txt"],
                       params["head_b"], num_classes)


if __name__ == "__main__":
    key = jax.random.PRNGKey(0)
    k_img, k_txt, k_wimg, k_emb, k_lw, k_lb = jax.random.split(key, 6)

    # Small shapes consistent with the forward pass
    B, C_in, H, W = 2, 3, 16, 16          # images NCHW
    L = 8                                  # text sequence length
    VOCAB = 64
    NUM_CLASSES = 8

    images = jax.random.normal(k_img, (B, C_in, H, W), dtype=jnp.float32)
    texts = jax.random.randint(k_txt, (B, L), 0, VOCAB, dtype=jnp.int32)

    # Deterministic parameter init (synthetic, not a checkpoint load)
    linear_w = 0.02 * jax.random.normal(k_lw, (NUM_CLASSES, FEAT_DIM),
                                        dtype=jnp.float32)   # torch Linear weight
    linear_b = 0.01 * jax.random.normal(k_lb, (NUM_CLASSES,),
                                        dtype=jnp.float32)   # torch Linear bias
    head_w_img, head_w_txt, head_b = prepare_head_params(linear_w, linear_b)

    params = {
        "w_img": 0.02 * jax.random.normal(k_wimg, (C_in * H * W, IMG_FEAT_DIM),
                                          dtype=jnp.float32),
        "embed": 0.02 * jax.random.normal(k_emb, (VOCAB, TXT_FEAT_DIM),
                                          dtype=jnp.float32),
        "head_w_img": head_w_img,    # [512, 128] bf16 (pre-transposed/padded)
        "head_w_txt": head_w_txt,    # [512, 128] bf16
        "head_b": head_b,            # [1, 128]   f32
    }

    logits = my_model_forward(params, images, texts, NUM_CLASSES)
    jax.block_until_ready(logits)

    # Pure-JAX reference of the head (concat + .float() + Linear), f32 weights.
    img_feat = encode_image_stub(images, params["w_img"]).astype(jnp.float32)
    txt_feat = encode_text_stub(texts, params["embed"]).astype(jnp.float32)
    feats = jnp.concatenate([img_feat, txt_feat], axis=1)
    ref = feats @ linear_w.T + linear_b
    assert logits.shape == (B, NUM_CLASSES)
    # Tolerance covers bf16 weight quantization inside the kernel (f32 accumulate).
    assert jnp.allclose(logits, ref, atol=2e-2, rtol=2e-2)

    print("KERNEL_OK")
</pallas_src>

<mosaic_0001>
module attributes {stable_mosaic.version = 11 : i64} {
  func.func @_head_kernel(%arg0: i32, %arg1: memref<2x512xbf16, #tpu.memory_space<vmem>>, %arg2: memref<2x512xbf16, #tpu.memory_space<vmem>>, %arg3: memref<512x128xbf16, #tpu.memory_space<vmem>>, %arg4: memref<512x128xbf16, #tpu.memory_space<vmem>>, %arg5: memref<1x128xf32, #tpu.memory_space<vmem>>, %arg6: memref<2x128xf32, #tpu.memory_space<vmem>>) attributes {dimension_semantics = [#tpu.dimension_semantics<parallel>], iteration_bounds = array<i64: 1>, scalar_prefetch = 0 : i64, scratch_operands = 0 : i64, tpu.core_type = #tpu.core_type<tc>, window_params = [{transform_indices = @transform_0, window_bounds = array<i64: 2, 512>}, {transform_indices = @transform_1, window_bounds = array<i64: 2, 512>}, {pipeline_mode = #tpu.pipeline_mode<synchronous>, transform_indices = @transform_2, window_bounds = array<i64: 512, 128>}, {pipeline_mode = #tpu.pipeline_mode<synchronous>, transform_indices = @transform_3, window_bounds = array<i64: 512, 128>}, {pipeline_mode = #tpu.pipeline_mode<synchronous>, transform_indices = @transform_4, window_bounds = array<i64: 1, 128>}, {transform_indices = @transform_5, window_bounds = array<i64: 2, 128>}]} {
    %c0 = arith.constant 0 : index
    %c0_0 = arith.constant 0 : index
    %0 = vector.load %arg1[%c0, %c0_0] : memref<2x512xbf16, #tpu.memory_space<vmem>>, vector<2x512xbf16>
    %c0_1 = arith.constant 0 : index
    %c0_2 = arith.constant 0 : index
    %1 = vector.load %arg3[%c0_1, %c0_2] : memref<512x128xbf16, #tpu.memory_space<vmem>>, vector<512x128xbf16>
    %cst = arith.constant dense<0.000000e+00> : vector<2x128xf32>
    %2 = tpu.matmul %0, %1, %cst {dimension_numbers = #tpu.dot_dimension_numbers<[1], [0], [0], [1], [0, 0, 1, 1], [], []>} : vector<2x512xbf16>, vector<512x128xbf16>, vector<2x128xf32> -> vector<2x128xf32>
    %c0_3 = arith.constant 0 : index
    %c0_4 = arith.constant 0 : index
    %3 = vector.load %arg2[%c0_3, %c0_4] : memref<2x512xbf16, #tpu.memory_space<vmem>>, vector<2x512xbf16>
    %c0_5 = arith.constant 0 : index
    %c0_6 = arith.constant 0 : index
    %4 = vector.load %arg4[%c0_5, %c0_6] : memref<512x128xbf16, #tpu.memory_space<vmem>>, vector<512x128xbf16>
    %cst_7 = arith.constant dense<0.000000e+00> : vector<2x128xf32>
    %5 = tpu.matmul %3, %4, %cst_7 {dimension_numbers = #tpu.dot_dimension_numbers<[1], [0], [0], [1], [0, 0, 1, 1], [], []>} : vector<2x512xbf16>, vector<512x128xbf16>, vector<2x128xf32> -> vector<2x128xf32>
    %6 = arith.addf %2, %5 : vector<2x128xf32>
    %c0_8 = arith.constant 0 : index
    %c0_9 = arith.constant 0 : index
    %7 = vector.load %arg5[%c0_8, %c0_9] : memref<1x128xf32, #tpu.memory_space<vmem>>, vector<1x128xf32>
    %8 = vector.broadcast %7 : vector<1x128xf32> to vector<2x128xf32>
    %9 = arith.addf %6, %8 : vector<2x128xf32>
    %c0_10 = arith.constant 0 : index
    %c0_11 = arith.constant 0 : index
    %10 = vector.load %arg6[%c0_10, %c0_11] : memref<2x128xf32, #tpu.memory_space<vmem>>, vector<2x128xf32>
    tpu.vector_store %arg6[%c0_10, %c0_11], %9 {strides = array<i32>} : memref<2x128xf32, #tpu.memory_space<vmem>>, vector<2x128xf32>,
    return
  }
  func.func @transform_0(%arg0: i32) -> (i32, i32) {
    %c0_i32 = arith.constant 0 : i32
    %c0_i32_0 = arith.constant 0 : i32
    return %arg0, %c0_i32 : i32, i32
  }
  func.func @transform_1(%arg0: i32) -> (i32, i32) {
    %c0_i32 = arith.constant 0 : i32
    %c0_i32_0 = arith.constant 0 : i32
    return %arg0, %c0_i32 : i32, i32
  }
  func.func @transform_2(%arg0: i32) -> (i32, i32) {
    %c0_i32 = arith.constant 0 : i32
    %c0_i32_0 = arith.constant 0 : i32
    %c0_i32_1 = arith.constant 0 : i32
    return %c0_i32, %c0_i32_0 : i32, i32
  }
  func.func @transform_3(%arg0: i32) -> (i32, i32) {
    %c0_i32 = arith.constant 0 : i32
    %c0_i32_0 = arith.constant 0 : i32
    %c0_i32_1 = arith.constant 0 : i32
    return %c0_i32, %c0_i32_0 : i32, i32
  }
  func.func @transform_4(%arg0: i32) -> (i32, i32) {
    %c0_i32 = arith.constant 0 : i32
    %c0_i32_0 = arith.constant 0 : i32
    %c0_i32_1 = arith.constant 0 : i32
    return %c0_i32, %c0_i32_0 : i32, i32
  }
  func.func @transform_5(%arg0: i32) -> (i32, i32) {
    %c0_i32 = arith.constant 0 : i32
    %c0_i32_0 = arith.constant 0 : i32
    return %arg0, %c0_i32 : i32, i32
  }
}

</mosaic_0001>

<bundles_post_ra>
// kernel: tpu_custom_call.1
= control target key start
LH: loop header
LB: loop body
LE: loop exit
PB: predicated region body
PF: predicated region fallthrough
CT: control target
= control target key end

     0   :  { %10 = vsyncpa [#allocation3], 0  ;;  %s1228_s0 = inlined_call_operand.hbm [shape: bf16[2,512], index: 0, kind: input, shape index: {}]   ;;  %s1229_s1 = inlined_call_operand.hbm [shape: bf16[2,512], index: 1, kind: input, shape index: {}]   ;;  %s1230_s2 = inlined_call_operand.hbm [shape: bf16[512,128], index: 2, kind: input, shape index: {}]   ;;  %s1231_s3 = inlined_call_operand.hbm [shape: bf16[512,128], index: 3, kind: input, shape index: {}]   ;;  %s1232_s4 = inlined_call_operand.vmem [shape: f32[1,128], index: 4, kind: input, shape index: {}]   ;;  %s1233_s5 = inlined_call_operand.hbm [shape: f32[2,128], index: 5, kind: output, shape index: {}]  }
   0x1   :  { %11 = vsyncpa [#allocation6], 0 }
   0x2   :  { %12 = vsyncpa [#allocation9], 0 }
   0x3   :  { %13 = vsyncpa [#allocation4], 0  ;;  %s1166_s18 = smov [#allocation5]   ;;  %s1167_s20 = smov [#allocation2]  }
   0x4   :  { %s30_s19 = sshll.u32 %s1166_s18, 4  ;;  %s20_s21 = sshll.u32 %s1167_s20, 4  ;;  %s31_s19 = int_to_ptr.vmem [resolvable:$true] %s30_s19  ;;  %s21_s21 = int_to_ptr.vmem [resolvable:$true] %s20_s21 }
   0x5   :  { %s1066_s22 = scalar_lea.vmem %s31_s19, 64  ;;  %p1071_p1 = scmp.lt.s32.totalorder %s31_s19, %s31_s19 }
   0x6   :  { %p1067_p0 = scmp.ne.s32.totalorder %s31_s19, %s1066_s22  ;;  %p1072_p2 = scmp.lt.s32.totalorder %s1066_s22, %s1066_s22 }
   0x8   :  { %p1073_p3 = por %p1072_p2, %p1071_p1 }
   0xa   :  { %p1074_p4 = pnand %p1073_p3, %p1067_p0 }
   0xc   :  { %1077 = shalt.err (!%p1074_p4)
}
   0xd   :  { %33 = dma.hbm_to_vmem [thread:$0]  %s1229_s1, 64, %s31_s19, [#allocation6]  }
   0xe   :  { %s1086_s25 = scalar_lea.vmem %s21_s21, 64  ;;  %p1091_p6 = scmp.lt.s32.totalorder %s21_s21, %s21_s21 }
   0xf   :  { %p1087_p5 = scmp.ne.s32.totalorder %s21_s21, %s1086_s25  ;;  %p1092_p7 = scmp.lt.s32.totalorder %s1086_s25, %s1086_s25 }
  0x11   :  { %p1093_p8 = por %p1092_p7, %p1091_p6 }
  0x13   :  { %p1094_p9 = pnand %p1093_p8, %p1087_p5 }
  0x15   :  { %1097 = shalt.err (!%p1094_p9)
}
  0x16   :  { %23 = dma.hbm_to_vmem [thread:$0]  %s1228_s0, 64, %s21_s21, [#allocation3]  }
  0x17   :  { %s1168_s28 = smov [#allocation7]  }
  0x18   :  { %s39_s29 = sshll.u32 %s1168_s28, 4  ;;  %s40_s29 = int_to_ptr.vmem [resolvable:$true] %s39_s29 }
  0x19   :  { %s1106_s30 = scalar_lea.vmem %s40_s29, 4096  ;;  %p1111_p11 = scmp.lt.s32.totalorder %s40_s29, %s40_s29 }
  0x1a   :  { %p1107_p10 = scmp.ne.s32.totalorder %s40_s29, %s1106_s30  ;;  %p1112_p12 = scmp.lt.s32.totalorder %s1106_s30, %s1106_s30 }
  0x1c   :  { %p1113_p13 = por %p1112_p12, %p1111_p11 }
  0x1e   :  { %p1114_p0 = pnand %p1113_p13, %p1107_p10 }
  0x20   :  { %1117 = shalt.err (!%p1114_p0)
}
  0x21   :  { %s1169_s1 = smov 64   ;;  %s1170_s6 = smov 4  }
  0x22   :  { %45 = dma.hbm_to_vmem [thread:$0]  %s1230_s2, 4096, %s40_s29, [#allocation6], %s1169_s1, %s1169_s1, %s1170_s6  }
  0x23   :  { %s1171_s9 = smov [#allocation8]  }
  0x24   :  { %s51_s10 = sshll.u32 %s1171_s9, 4  ;;  %s52_s10 = int_to_ptr.vmem [resolvable:$true] %s51_s10 }
  0x25   :  { %s1126_s0 = scalar_lea.vmem %s52_s10, 4096  ;;  %p1131_p2 = scmp.lt.s32.totalorder %s52_s10, %s52_s10 }
  0x26   :  { %p1127_p1 = scmp.ne.s32.totalorder %s52_s10, %s1126_s0  ;;  %p1132_p3 = scmp.lt.s32.totalorder %s1126_s0, %s1126_s0 }
  0x28   :  { %p1133_p4 = por %p1132_p3, %p1131_p2 }
  0x2a   :  { %p1134_p5 = pnand %p1133_p4, %p1127_p1 }
  0x2c   :  { %1137 = shalt.err (!%p1134_p5)
}
  0x2d   :  { %57 = dma.hbm_to_vmem [thread:$0]  %s1231_s3, 4096, %s52_s10, [#allocation9], %s1169_s1, %s1169_s1, %s1170_s6  }
  0x2e   :  { %1158 = dma.done.wait [#allocation3], 64  }
  0x2f   :  { %1159 = vsyncadd [#allocation3], 4294967232 }
  0x30   :  { %1160 = dma.done.wait [#allocation6], 4160  }
  0x31   :  { %1161 = vsyncadd [#allocation6], 4294963136 }
  0x32   :  { %1162 = dma.done.wait [#allocation9], 4096  }
  0x33   :  { %1163 = vsyncadd [#allocation9], 4294963200  ;;  %v994_v0 = vld [vmem:[#allocation8 + $0x78] sm:$0xff]   ;;  %v998_v4 = vld [vmem:[#allocation8 + $0x70] sm:$0xff]   ;;  %v1172_v22 = vmov 1966171168   ;;  %v215_v24 = vlaneseq }
  0x34   :  { %v995_v1 = vld [vmem:[#allocation8 + $0xf8] sm:$0xff]   ;;  %898 = vmatprep.subr.bf16.mxu0 %v994_v0  ;;  %v999_v5 = vld [vmem:[#allocation8 + $0xf0] sm:$0xff]   ;;  %v1002_v8 = vld [vmem:[#allocation8 + $0x68] sm:$0xff]   ;;  %v213_v23 = vunpack.c.l.s4 %v1172_v22  ;;  %s1173_s13 = smov [#allocation10]  }
  0x35   :  { %v996_v2 = vld [vmem:[#allocation8 + $0x38] sm:$0xff]   ;;  %920 = vmatprep.subr.bf16.mxu1 %v995_v1  ;;  %v1000_v6 = vld [vmem:[#allocation8 + $0x30] sm:$0xff]   ;;  %v1003_v9 = vld [vmem:[#allocation8 + $0xe8] sm:$0xff]   ;;  %v216_v30 = vshrl.u32 %v215_v24, 7  ;;  %s820_s14 = sshll.u32 %s1173_s13, 4  ;;  %s821_s14 = int_to_ptr.vmem [resolvable:$true] %s820_s14 }
  0x36   :  { %v997_v3 = vld [vmem:[#allocation8 + $0xb8] sm:$0xff]   ;;  %899 = vmatpush3.bf16.msra.mxu0 %v996_v2  ;;  %v1001_v7 = vld [vmem:[#allocation8 + $0xb0] sm:$0xff]   ;;  %v1004_v10 = vld [vmem:[#allocation8 + $0x28] sm:$0xff]   ;;  %v214_v29 = vunpack.c.0.s8 %v213_v23  ;;  %s1138_s15 = scalar_lea.vmem %s821_s14, 32  ;;  %p1143_p7 = scmp.lt.s32.totalorder %s821_s14, %s821_s14 }
  0x37   :  { %921 = vmatpush3.bf16.msra.mxu1 %v997_v3  ;;  %900 = vmatprep.subr.bf16.mxu0 %v998_v4  ;;  %v1005_v11 = vld [vmem:[#allocation8 + $0xa8] sm:$0xff]   ;;  %v1006_v12 = vld [vmem:[#allocation8 + $0x60] sm:$0xff]   ;;  %v1010_v16 = vld [vmem:[#allocation8 + $0x58] sm:$0xff]   ;;  %p1139_p6 = scmp.ne.s32.totalorder %s821_s14, %s1138_s15  ;;  %p1144_p8 = scmp.lt.s32.totalorder %s1138_s15, %s1138_s15 }
  0x38   :  { %922 = vmatprep.subr.bf16.mxu1 %v999_v5  ;;  %v1007_v13 = vld [vmem:[#allocation8 + $0xe0] sm:$0xff]   ;;  %v1011_v17 = vld [vmem:[#allocation8 + $0xd8] sm:$0xff]   ;;  %v1014_v20 = vld [vmem:[#allocation8 + $0x50] sm:$0xff]   ;;  %v1216_v35 = vsub.s32 %v214_v29, %v216_v30 }
  0x39   :  { %v1008_v14 = vld [vmem:[#allocation8 + $0x20] sm:$0xff]   ;;  %v1012_v18 = vld [vmem:[#allocation8 + $0x18] sm:$0xff]   ;;  %v1015_v21 = vld [vmem:[#allocation8 + $0xd0] sm:$0xff]   ;;  %p1145_p9 = por %p1144_p8, %p1143_p7 }
  0x3a   :  { %901 = vmatpush3.bf16.msra.mxu0 %v1000_v6  ;;  %v1009_v15 = vld [vmem:[#allocation8 + $0xa0] sm:$0xff]   ;;  %v1013_v19 = vld [vmem:[#allocation8 + $0x98] sm:$0xff]   ;;  %v1016_v25 = vld [vmem:[#allocation8 + $0x10] sm:$0xff]  }
  0x3b   :  { %923 = vmatpush3.bf16.msra.mxu1 %v1001_v7  ;;  %902 = vmatprep.subr.bf16.mxu0 %v1002_v8  ;;  %v1017_v26 = vld [vmem:[#allocation8 + $0x90] sm:$0xff]   ;;  %v1018_v27 = vld [vmem:[#allocation8 + $0x48] sm:$0xff]   ;;  %v1022_v33 = vld [vmem:[#allocation8 + $0x40] sm:$0xff]   ;;  %p1146_p10 = pnand %p1145_p9, %p1139_p6 }
  0x3c   :  { %924 = vmatprep.subr.bf16.mxu1 %v1003_v9  ;;  %v1019_v28 = vld [vmem:[#allocation8 + $0xc8] sm:$0xff]   ;;  %v1023_v34 = vld [vmem:[#allocation8 + $0xc0] sm:$0xff]   ;;  %v831_v38 = vld.sshfl [vmem:[#allocation5] sm:$0x33 pattern:$0x75316420] }
  0x3d   :  { %v1020_v31 = vld [vmem:[#allocation8 + $0x8] sm:$0xff]   ;;  %v1024_v36 = vld [vmem:[#allocation8] sm:$0xff]   ;;  %v211_v39 = vcombine.high %v831_v38, %v831_v38  ;;  %v218_v40 = vrot.slane %v831_v38, %v1216_v35  ;;  %v1026_v41 = vld [vmem:[#allocation7 + $0x78] sm:$0xff]  }
  0x3e   :  { %903 = vmatpush3.bf16.msra.mxu0 %v1004_v10  ;;  %v1021_v32 = vld [vmem:[#allocation8 + $0x88] sm:$0xff]   ;;  %v1025_v37 = vld [vmem:[#allocation8 + $0x80] sm:$0xff]   ;;  %v1027_v42 = vld [vmem:[#allocation7 + $0xf8] sm:$0xff]  }
  0x3f   :  { %925 = vmatpush3.bf16.msra.mxu1 %v1005_v11  ;;  %904 = vmatprep.subr.bf16.mxu0 %v1006_v12  ;;  %v225_v43 = vrot.slane %v211_v39, %v1216_v35  ;;  %v1028_v44 = vld [vmem:[#allocation7 + $0x38] sm:$0xff]   ;;  %v226_v45 = vcombine.high %v218_v40, %v218_v40  ;;  %v1030_v48 = vld [vmem:[#allocation7 + $0x70] sm:$0xff]   ;;  %v1034_v52 = vld [vmem:[#allocation7 + $0x68] sm:$0xff]  }
  0x40   :  { %926 = vmatprep.subr.bf16.mxu1 %v1007_v13  ;;  %v1029_v46 = vld [vmem:[#allocation7 + $0xb8] sm:$0xff]   ;;  %v1031_v49 = vld [vmem:[#allocation7 + $0xf0] sm:$0xff]   ;;  %v1035_v53 = vld [vmem:[#allocation7 + $0xe8] sm:$0xff]  }
  0x41   :  { %456 = vmatprep.mubr.bf16.mxu0 %v225_v43  ;;  %v227_v47 = vcombine.high %v225_v43, %v225_v43  ;;  %v1032_v50 = vld [vmem:[#allocation7 + $0x30] sm:$0xff]   ;;  %v1036_v54 = vld [vmem:[#allocation7 + $0x28] sm:$0xff]   ;;  %v1038_v56 = vld [vmem:[#allocation7 + $0x60] sm:$0xff]  }
  0x42   :  { %905 = vmatpush3.bf16.msra.mxu0 %v1008_v14  ;;  %v1033_v51 = vld [vmem:[#allocation7 + $0xb0] sm:$0xff]   ;;  %v1037_v55 = vld [vmem:[#allocation7 + $0xa8] sm:$0xff]   ;;  %v1039_v57 = vld [vmem:[#allocation7 + $0xe0] sm:$0xff]  }
  0x43   :  { %927 = vmatpush3.bf16.msra.mxu1 %v1009_v15  ;;  %906 = vmatprep.subr.bf16.mxu0 %v1010_v16  ;;  %v1040_v58 = vld [vmem:[#allocation7 + $0x20] sm:$0xff]   ;;  %v1042_v60 = vld [vmem:[#allocation7 + $0x58] sm:$0xff]   ;;  %v1046_v0 = vld [vmem:[#allocation7 + $0x50] sm:$0xff]  }
  0x44   :  { %928 = vmatprep.subr.bf16.mxu1 %v1011_v17  ;;  %496 = vmatprep.mubr.bf16.mxu1 %v227_v47  ;;  %v1041_v59 = vld [vmem:[#allocation7 + $0xa0] sm:$0xff]   ;;  %v1043_v61 = vld [vmem:[#allocation7 + $0xd8] sm:$0xff]   ;;  %v1047_v1 = vld [vmem:[#allocation7 + $0xd0] sm:$0xff]  }
  0x45   :  { %v1044_v62 = vld [vmem:[#allocation7 + $0x18] sm:$0xff]   ;;  %v1048_v2 = vld [vmem:[#allocation7 + $0x10] sm:$0xff]   ;;  %v1050_v4 = vld [vmem:[#allocation7 + $0x48] sm:$0xff]  }
  0x46   :  { %907 = vmatpush3.bf16.msra.mxu0 %v1012_v18  ;;  %v1045_v63 = vld [vmem:[#allocation7 + $0x98] sm:$0xff]   ;;  %v1049_v3 = vld [vmem:[#allocation7 + $0x90] sm:$0xff]   ;;  %v1051_v5 = vld [vmem:[#allocation7 + $0xc8] sm:$0xff]  }
  0x47   :  { %929 = vmatpush3.bf16.msra.mxu1 %v1013_v19  ;;  %908 = vmatprep.subr.bf16.mxu0 %v1014_v20  ;;  %v1052_v6 = vld [vmem:[#allocation7 + $0x8] sm:$0xff]   ;;  %v1054_v8 = vld [vmem:[#allocation7 + $0x40] sm:$0xff]   ;;  %v864_v12 = vld.sshfl [vmem:[#allocation2] sm:$0x33 pattern:$0x75316420] }
  0x48   :  { %930 = vmatprep.subr.bf16.mxu1 %v1015_v21  ;;  %v1053_v7 = vld [vmem:[#allocation7 + $0x88] sm:$0xff]   ;;  %v1055_v9 = vld [vmem:[#allocation7 + $0xc0] sm:$0xff]   ;;  %v512_v13 = vcombine.high %v864_v12, %v864_v12  ;;  %v519_v14 = vrot.slane %v864_v12, %v1216_v35  ;;  %v897_v39 = vld [vmem:[%s1232_s4] ss:$0 sm:$0xff] }
  0x49   :  { %v1056_v10 = vld [vmem:[#allocation7] sm:$0xff]  }
  0x4a   :  { %909 = vmatpush3.bf16.msra.mxu0 %v1016_v25  ;;  %v1057_v11 = vld [vmem:[#allocation7 + $0x80] sm:$0xff]   ;;  %v526_v15 = vrot.slane %v512_v13, %v1216_v35  ;;  %v527_v16 = vcombine.high %v519_v14, %v519_v14 }
  0x4b   :  { %931 = vmatpush3.bf16.msra.mxu1 %v1017_v26  ;;  %910 = vmatprep.subr.bf16.mxu0 %v1018_v27 }
  0x4c   :  { %932 = vmatprep.subr.bf16.mxu1 %v1019_v28  ;;  %v528_v17 = vcombine.high %v526_v15, %v526_v15 }
  0x4e   :  { %911 = vmatpush3.bf16.msra.mxu0 %v1020_v31 }
  0x4f   :  { %933 = vmatpush3.bf16.msra.mxu1 %v1021_v32  ;;  %912 = vmatprep.subr.bf16.mxu0 %v1022_v33 }
  0x50   :  { %934 = vmatprep.subr.bf16.mxu1 %v1023_v34 }
  0x52   :  { %913 = vmatpush3.bf16.msra.mxu0 %v1024_v36 }
  0x53   :  { %935 = vmatpush3.bf16.msra.mxu1 %v1025_v37  ;;  %942 = vmatprep.subr.bf16.mxu0 %v1026_v41 }
  0x54   :  { %964 = vmatprep.subr.bf16.mxu1 %v1027_v42 }
  0x55   :  { %457 = vmatmul.mubr.bf16.vlgmr.msra.gmra.mxu0 %v218_v40 }
  0x56   :  { %943 = vmatpush3.bf16.msra.mxu0 %v1028_v44  ;;  %497 = vmatmul.mubr.bf16.vlgmr.msra.gmra.mxu1 %v226_v45 }
  0x57   :  { %944 = vmatprep.subr.bf16.mxu0 %v1030_v48  ;;  %965 = vmatpush3.bf16.msra.mxu1 %v1029_v46 }
  0x58   :  { %966 = vmatprep.subr.bf16.mxu1 %v1031_v49  ;;  %757 = vmatprep.mubr.bf16.mxu0 %v526_v15 }
  0x59   :  { %797 = vmatprep.mubr.bf16.mxu1 %v528_v17 }
  0x5a   :  { %945 = vmatpush3.bf16.msra.mxu0 %v1032_v50 }
  0x5b   :  { %946 = vmatprep.subr.bf16.mxu0 %v1034_v52  ;;  %967 = vmatpush3.bf16.msra.mxu1 %v1033_v51 }
  0x5c   :  { %968 = vmatprep.subr.bf16.mxu1 %v1035_v53 }
  0x5e   :  { %947 = vmatpush3.bf16.msra.mxu0 %v1036_v54 }
  0x5f   :  { %948 = vmatprep.subr.bf16.mxu0 %v1038_v56  ;;  %969 = vmatpush3.bf16.msra.mxu1 %v1037_v55 }
  0x60   :  { %970 = vmatprep.subr.bf16.mxu1 %v1039_v57 }
  0x62   :  { %949 = vmatpush3.bf16.msra.mxu0 %v1040_v58 }
  0x63   :  { %950 = vmatprep.subr.bf16.mxu0 %v1042_v60  ;;  %971 = vmatpush3.bf16.msra.mxu1 %v1041_v59 }
  0x64   :  { %972 = vmatprep.subr.bf16.mxu1 %v1043_v61 }
  0x66   :  { %951 = vmatpush3.bf16.msra.mxu0 %v1044_v62 }
  0x67   :  { %952 = vmatprep.subr.bf16.mxu0 %v1046_v0  ;;  %973 = vmatpush3.bf16.msra.mxu1 %v1045_v63 }
  0x68   :  { %974 = vmatprep.subr.bf16.mxu1 %v1047_v1 }
  0x6a   :  { %953 = vmatpush3.bf16.msra.mxu0 %v1048_v2 }
  0x6b   :  { %954 = vmatprep.subr.bf16.mxu0 %v1050_v4  ;;  %975 = vmatpush3.bf16.msra.mxu1 %v1049_v3 }
  0x6c   :  { %976 = vmatprep.subr.bf16.mxu1 %v1051_v5 }
  0x6e   :  { %955 = vmatpush3.bf16.msra.mxu0 %v1052_v6 }
  0x6f   :  { %956 = vmatprep.subr.bf16.mxu0 %v1054_v8  ;;  %977 = vmatpush3.bf16.msra.mxu1 %v1053_v7 }
  0x70   :  { %978 = vmatprep.subr.bf16.mxu1 %v1055_v9 }
  0x72   :  { %957 = vmatpush3.bf16.msra.mxu0 %v1056_v10 }
  0x73   :  { %979 = vmatpush3.bf16.msra.mxu1 %v1057_v11 }
  0x75   :  { %758 = vmatmul.mubr.bf16.vlgmr.msra.gmra.mxu0 %v519_v14 }
  0x76   :  { %798 = vmatmul.mubr.bf16.vlgmr.msra.gmra.mxu1 %v527_v16 }
 0x115   :  { %v914_v18 = vpop.f32.mrf.mxu0 }
 0x116   :  { %v936_v19 = vpop.f32.mrf.mxu1 }
 0x117   :  { %v915_v20 = vpop.f32.mrf.mxu0 }
 0x118   :  { %v937_v21 = vpop.f32.mrf.mxu1  ;;  %v916_v26 = vadd.f32 %v915_v20, %v914_v18 }
 0x119   :  { %v917_v22 = vpop.f32.mrf.mxu0  ;;  %v938_v27 = vadd.f32 %v937_v21, %v936_v19 }
 0x11a   :  { %v939_v23 = vpop.f32.mrf.mxu1 }
 0x11b   :  { %v918_v24 = vpop.f32.mrf.mxu0  ;;  %v499_v31 = vadd.f32 %v938_v27, %v916_v26 }
 0x11c   :  { %v940_v25 = vpop.f32.mrf.mxu1 }
 0x135   :  { %v958_v28 = vpop.f32.mrf.mxu0 }
 0x136   :  { %v980_v29 = vpop.f32.mrf.mxu1 }
 0x137   :  { %v959_v30 = vpop.f32.mrf.mxu0 }
 0x138   :  { %v960_v32 = vadd.f32 %v959_v30, %v958_v28  ;;  %v981_v33 = vpop.f32.mrf.mxu1 }
 0x139   :  { %v961_v34 = vpop.f32.mrf.mxu0  ;;  %v982_v36 = vadd.f32 %v981_v33, %v980_v29 }
 0x13a   :  { %v760_v35 = vadd.f32 %v960_v32, %v499_v31  ;;  %v983_v37 = vpop.f32.mrf.mxu1 }
 0x13b   :  { %v962_v38 = vpop.f32.mrf.mxu0 }
 0x13c   :  { %v800_v40 = vadd.f32 %v982_v36, %v760_v35  ;;  %v984_v41 = vpop.f32.mrf.mxu1 }
 0x13e   :  { %v812_v42 = vadd.f32 %v897_v39, %v800_v40 }
 0x140   :  { %813 = vst [vmem:[#allocation10] sm:$0x3] %v812_v42 }
 0x141   :  { %1149 = shalt.err (!%p1146_p10)
}
 0x142   :  { %823 = dma.vmem_to_hbm [thread:$0]  %s821_s14, 32, %s1233_s5, [#allocation4]  }
 0x143   :  { %1164 = dma.done.wait [#allocation4], 32  }
 0x144   :  { %1165 = vsyncadd [#allocation4], 4294967264 }
 0x145   :  { %827 = vsyncpa [#allocation3], 1 }
 0x146   :  { %828 = vsyncpa [#allocation6], 1 }
 0x147   :  { %829 = vsyncpa [#allocation9], 1 }
 0x148   :  { %830 = vsyncpa [#allocation4], 1 }

</bundles_post_ra>
